<compile_context>
chip_gen: v5e
topology: v5e:2x2
jax: 0.10.0
libtpu: 0.0.40
codegen_flags: <defaults>
</compile_context>

<pallas_src>
import math
from functools import partial

import jax
import jax.numpy as jnp
from jax.experimental import pallas as pl
from jax.experimental.pallas import tpu as pltpu


# ----------------------------------------------------------------------------------
# helpers
# ----------------------------------------------------------------------------------
def _layernorm(x, eps=1e-6):
    # nn.LayerNorm(hidden, elementwise_affine=False, eps=1e-6)  (f32 math)
    mu = jnp.mean(x, axis=-1, keepdims=True)
    var = jnp.mean((x - mu) ** 2, axis=-1, keepdims=True)
    return (x - mu) * jax.lax.rsqrt(var + eps)


def _gelu_tanh(x):
    # nn.GELU(approximate='tanh')  (f32 math)
    c = math.sqrt(2.0 / math.pi)
    return 0.5 * x * (1.0 + jnp.tanh(c * (x + 0.044715 * x * x * x)))


def _pick_tile(n, candidates):
    for t in candidates:
        if t <= n and n % t == 0:
            return t
    return n


def _vmem_budget():
    """~3/4 of per-core VMEM: ~96 MiB on v5e/v6e (128 MiB), ~48 MiB on v7x (64 MiB)."""
    try:
        cap = pltpu.get_tpu_info().vmem_capacity_bytes
    except Exception:
        cap = 64 * 1024 * 1024            # conservative fallback, fits every generation
    return int(cap * 3 // 4)


def _wspec(shape, index_map):
    """Constant-index block (weights/biases): fetched once -> single-buffer it."""
    try:
        return pl.BlockSpec(shape, index_map, pipeline_mode=pl.Buffered(1))
    except Exception:                     # older jax without pipeline_mode support
        return pl.BlockSpec(shape, index_map)


# ----------------------------------------------------------------------------------
# Kernel 1: q/k/v = modulate(norm1(x)) @ W + b, written head-major.   grid = (B, N//TQ)
# ----------------------------------------------------------------------------------
def qkv_kernel(x_ref, shift_ref, scale_ref,
               wq_ref, wk_ref, wv_ref, bq_ref, bk_ref, bv_ref,
               q_ref, k_ref, v_ref, *, H, hd, mxu_dtype):
    x = x_ref[0]                                               # (TQ, D) f32
    h = _layernorm(x) * (1.0 + scale_ref[0]) + shift_ref[0]    # modulate(norm1(x))
    hm = h.astype(mxu_dtype)
    # Three full-depth, full-width matmuls (best MXU utilization), then per-head
    # slice-stores so q/k/v leave the kernel already in (B, H, N, hd) layout and
    # the previous full-tensor XLA transpose between kernels 1 and 2 disappears.
    # 1/sqrt(hd) is pre-folded into wq/bq in the wrapper.
    q = jnp.dot(hm, wq_ref[...], preferred_element_type=jnp.float32) + bq_ref[...]
    k = jnp.dot(hm, wk_ref[...], preferred_element_type=jnp.float32) + bk_ref[...]
    v = jnp.dot(hm, wv_ref[...], preferred_element_type=jnp.float32) + bv_ref[...]
    for hh in range(H):                                        # static unroll
        sl = slice(hh * hd, (hh + 1) * hd)
        q_ref[0, hh] = q[:, sl].astype(q_ref.dtype)
        k_ref[0, hh] = k[:, sl].astype(k_ref.dtype)
        v_ref[0, hh] = v[:, sl].astype(v_ref.dtype)


# ----------------------------------------------------------------------------------
# Kernel 2: flash attention (heads batched) + folded per-head output projection +
#           gated residual.                                    grid = (B, N//TQ, N//TK)
# ----------------------------------------------------------------------------------
def attn_kernel(q_ref, k_ref, v_ref, x_ref, gate_ref, wp_ref, bp_ref, o_ref,
                m_sc, l_sc, acc_sc, *, H, mxu_dtype, approx_recip):
    ki = pl.program_id(2)

    @pl.when(ki == 0)
    def _():
        m_sc[...] = jnp.full(m_sc.shape, -jnp.inf, jnp.float32)
        l_sc[...] = jnp.zeros(l_sc.shape, jnp.float32)
        acc_sc[...] = jnp.zeros(acc_sc.shape, jnp.float32)

    q = q_ref[0]                                               # (H, TQ, hd) mxu_dtype
    k = k_ref[0]                                               # (H, TK, hd)
    v = v_ref[0]                                               # (H, TK, hd)

    # 1/sqrt(hd) already folded into the Q weights -> no per-KV-step VPU multiply.
    s = jnp.einsum("hqd,hkd->hqk", q, k,
                   preferred_element_type=jnp.float32)         # (H, TQ, TK) f32

    m_prev = m_sc[...]
    m_new = jnp.maximum(m_prev, jnp.max(s, axis=-1, keepdims=True))
    alpha = jnp.exp(m_prev - m_new)
    p = jnp.exp(s - m_new)                                     # f32 probabilities

    l_sc[...] = alpha * l_sc[...] + jnp.sum(p, axis=-1, keepdims=True)
    acc_sc[...] = alpha * acc_sc[...] + jnp.einsum(
        "hqk,hkd->hqd", p.astype(mxu_dtype), v,
        preferred_element_type=jnp.float32)                    # (H, TQ, hd)
    m_sc[...] = m_new

    @pl.when(ki == pl.num_programs(2) - 1)
    def _():
        inv_l = pl.reciprocal(l_sc[...], approx=approx_recip)  # EUP slot when approx
        attn = (acc_sc[...] * inv_l).astype(mxu_dtype)         # (H, TQ, hd)
        TQ = x_ref.shape[1]
        D = wp_ref.shape[2]
        # Folded output projection: sum_h attn[h] @ w_proj[h].  Kept as H small
        # leading-axis matmuls (no in-kernel (H,TQ,hd)->(TQ,D) relayout needed);
        # this is epilogue-only work, run once per query tile.
        proj = jnp.zeros((TQ, D), jnp.float32)
        for h in range(H):
            proj = proj + jnp.dot(attn[h], wp_ref[h],
                                  preferred_element_type=jnp.float32)
        proj = proj + bp_ref[...]
        o_ref[0] = (x_ref[0] + gate_ref[0] * proj).astype(o_ref.dtype)


# ----------------------------------------------------------------------------------
# Kernel 3a: gated MLP, weights fully VMEM-resident.           grid = (B, N//TQ)
# ----------------------------------------------------------------------------------
def mlp_kernel_resident(x_ref, shift_ref, scale_ref, gate_ref,
                        w1_ref, b1_ref, w2_ref, b2_ref, o_ref, *, mxu_dtype):
    x = x_ref[0]                                               # (TQ, D) f32
    h = (_layernorm(x) * (1.0 + scale_ref[0]) + shift_ref[0]).astype(mxu_dtype)
    a = jnp.dot(h, w1_ref[...], preferred_element_type=jnp.float32) + b1_ref[...]
    a = _gelu_tanh(a)
    y = jnp.dot(a.astype(mxu_dtype), w2_ref[...],
                preferred_element_type=jnp.float32) + b2_ref[...]
    o_ref[0] = (x + gate_ref[0] * y).astype(o_ref.dtype)


# ----------------------------------------------------------------------------------
# Kernel 3b: gated MLP, tiled over the hidden dim Dm (fallback for small VMEM).
#                                                              grid = (B, N//TQ, Dm//TDm)
# ----------------------------------------------------------------------------------
def mlp_kernel_tiled(x_ref, shift_ref, scale_ref, gate_ref,
                     w1_ref, b1_ref, w2_ref, b2_ref, o_ref, h_sc, acc_sc, *,
                     mxu_dtype):
    j = pl.program_id(2)

    @pl.when(j == 0)
    def _():
        x = x_ref[0]
        h = _layernorm(x) * (1.0 + scale_ref[0]) + shift_ref[0]
        h_sc[...] = h.astype(h_sc.dtype)
        acc_sc[...] = jnp.zeros(acc_sc.shape, jnp.float32)

    a = jnp.dot(h_sc[...], w1_ref[...],
                preferred_element_type=jnp.float32) + b1_ref[...]
    a = _gelu_tanh(a)
    acc_sc[...] += jnp.dot(a.astype(mxu_dtype), w2_ref[...],
                           preferred_element_type=jnp.float32)

    @pl.when(j == pl.num_programs(2) - 1)
    def _():
        o_ref[0] = (x_ref[0] + gate_ref[0] * (acc_sc[...] + b2_ref[...])
                    ).astype(o_ref.dtype)


# ----------------------------------------------------------------------------------
# Wrapper
# ----------------------------------------------------------------------------------
def dit_block(x, c, params, num_heads, *, mxu_dtype=jnp.bfloat16, mlp_resident=None):
    B, N, D = x.shape
    H = num_heads
    assert D % H == 0, "hidden must be divisible by num_heads"
    hd = D // H
    Dm = params["w_fc1"].shape[1]
    f32 = jnp.float32
    it = jnp.dtype(mxu_dtype).itemsize
    approx_recip = mxu_dtype != jnp.float32      # exact reciprocal on the f32 path

    budget = _vmem_budget()

    # ---- tile selection (keep the f32 (H, TQ, TK) score tile inside the budget) ----
    TQ = _pick_tile(N, (512, 256, 128, 64, 32, 16, 8))
    TK = _pick_tile(N, (256, 128, 64, 32, 16, 8))
    while TQ > 128 and N % (TQ // 2) == 0 and 2 * H * TQ * TK * 4 > budget // 4:
        TQ //= 2
    while TK > 128 and N % (TK // 2) == 0 and 2 * H * TQ * TK * 4 > budget // 4:
        TK //= 2
    nq, nk = N // TQ, N // TK
    # NOTE(v7x): keep B * nq >= 2 so megacore sharding has work for both cores.

    # ---- adaLN hoisted out of the kernels (tiny matvec, keeps w_ada out of VMEM) ----
    ada = jax.nn.silu(c) @ params["w_ada"] + params["b_ada"]          # (B, 6D)
    mods = [m.reshape(B, 1, D) for m in jnp.split(ada, 6, axis=-1)]
    shift_msa, scale_msa, gate_msa, shift_mlp, scale_mlp, gate_mlp = mods

    # ---- one-time weight transforms (XLA, zero recurring cost) ----
    w_qkv, b_qkv = params["w_qkv"], params["b_qkv"]
    scale = 1.0 / math.sqrt(hd)                     # folded into the Q projection
    w_q = (w_qkv[:, :D] * scale).astype(mxu_dtype)
    w_k = w_qkv[:, D:2 * D].astype(mxu_dtype)
    w_v = w_qkv[:, 2 * D:].astype(mxu_dtype)
    b_q = (b_qkv[:, :D] * scale).astype(f32)
    b_k = b_qkv[:, D:2 * D].astype(f32)
    b_v = b_qkv[:, 2 * D:].astype(f32)
    w_proj_h = params["w_proj"].reshape(H, hd, D).astype(mxu_dtype)
    b_proj = params["b_proj"].astype(f32)
    w_fc1 = params["w_fc1"].astype(mxu_dtype)
    w_fc2 = params["w_fc2"].astype(mxu_dtype)
    b_fc1 = params["b_fc1"].astype(f32)
    b_fc2 = params["b_fc2"].astype(f32)

    mod2 = pl.BlockSpec((1, 1, D), lambda b, i: (b, 0, 0))
    mod3 = pl.BlockSpec((1, 1, D), lambda b, i, j: (b, 0, 0))

    # ---------------- kernel 1: qkv (head-major outputs) ----------------
    q, k, v = pl.pallas_call(
        partial(qkv_kernel, H=H, hd=hd, mxu_dtype=mxu_dtype),
        out_shape=(jax.ShapeDtypeStruct((B, H, N, hd), mxu_dtype),
                   jax.ShapeDtypeStruct((B, H, N, hd), mxu_dtype),
                   jax.ShapeDtypeStruct((B, H, N, hd), mxu_dtype)),
        grid=(B, nq),
        in_specs=[
            pl.BlockSpec((1, TQ, D), lambda b, i: (b, i, 0)),
            mod2, mod2,
            _wspec((D, D), lambda b, i: (0, 0)),
            _wspec((D, D), lambda b, i: (0, 0)),
            _wspec((D, D), lambda b, i: (0, 0)),
            _wspec((1, D), lambda b, i: (0, 0)),
            _wspec((1, D), lambda b, i: (0, 0)),
            _wspec((1, D), lambda b, i: (0, 0)),
        ],
        out_specs=(pl.BlockSpec((1, H, TQ, hd), lambda b, i: (b, 0, i, 0)),
                   pl.BlockSpec((1, H, TQ, hd), lambda b, i: (b, 0, i, 0)),
                   pl.BlockSpec((1, H, TQ, hd), lambda b, i: (b, 0, i, 0))),
        compiler_params=pltpu.CompilerParams(
            dimension_semantics=("parallel", "parallel"),
            vmem_limit_bytes=budget),
        cost_estimate=pl.CostEstimate(
            flops=2 * B * N * D * 3 * D,
            transcendentals=B * N,
            bytes_accessed=(4 * B * N * D + 3 * B * N * D * it
                            + 3 * D * D * it + 6 * D * 4 + 2 * B * D * 4)),
    )(x, shift_msa, scale_msa, w_q, w_k, w_v, b_q, b_k, b_v)

    # ---------------- kernel 2: flash attention + proj + gated residual ----------------
    x1 = pl.pallas_call(
        partial(attn_kernel, H=H, mxu_dtype=mxu_dtype, approx_recip=approx_recip),
        out_shape=jax.ShapeDtypeStruct((B, N, D), x.dtype),
        grid=(B, nq, nk),
        in_specs=[
            pl.BlockSpec((1, H, TQ, hd), lambda b, i, j: (b, 0, i, 0)),
            pl.BlockSpec((1, H, TK, hd), lambda b, i, j: (b, 0, j, 0)),
            pl.BlockSpec((1, H, TK, hd), lambda b, i, j: (b, 0, j, 0)),
            pl.BlockSpec((1, TQ, D), lambda b, i, j: (b, i, 0)),
            mod3,
            _wspec((H, hd, D), lambda b, i, j: (0, 0, 0)),
            _wspec((1, D), lambda b, i, j: (0, 0)),
        ],
        out_specs=pl.BlockSpec((1, TQ, D), lambda b, i, j: (b, i, 0)),
        scratch_shapes=[
            pltpu.VMEM((H, TQ, 1), jnp.float32),     # running max m
            pltpu.VMEM((H, TQ, 1), jnp.float32),     # running denom l
            pltpu.VMEM((H, TQ, hd), jnp.float32),    # acc
        ],
        compiler_params=pltpu.CompilerParams(
            dimension_semantics=("parallel", "parallel", "arbitrary"),
            vmem_limit_bytes=budget),
        cost_estimate=pl.CostEstimate(
            flops=4 * B * H * N * N * hd + 2 * B * N * D * D,
            transcendentals=2 * B * H * N * N,
            bytes_accessed=(B * N * D * it            # q read
                            + 2 * nq * B * N * D * it  # k/v re-read per query tile
                            + 2 * 4 * B * N * D        # x read + out write
                            + D * D * it + D * 4 + B * D * 4)),
    )(q, k, v, x, gate_msa, w_proj_h, b_proj)

    # ---------------- kernel 3: gated MLP ----------------
    if mlp_resident is None:
        mlp_resident = 2 * D * Dm * it <= budget // 3   # keep weights resident if they fit
    mlp_flops = 4 * B * N * D * Dm

    if mlp_resident:
        out = pl.pallas_call(
            partial(mlp_kernel_resident, mxu_dtype=mxu_dtype),
            out_shape=jax.ShapeDtypeStruct((B, N, D), x.dtype),
            grid=(B, nq),
            in_specs=[
                pl.BlockSpec((1, TQ, D), lambda b, i: (b, i, 0)),
                mod2, mod2, mod2,
                _wspec((D, Dm), lambda b, i: (0, 0)),
                _wspec((1, Dm), lambda b, i: (0, 0)),
                _wspec((Dm, D), lambda b, i: (0, 0)),
                _wspec((1, D), lambda b, i: (0, 0)),
            ],
            out_specs=pl.BlockSpec((1, TQ, D), lambda b, i: (b, i, 0)),
            compiler_params=pltpu.CompilerParams(
                dimension_semantics=("parallel", "parallel"),
                vmem_limit_bytes=budget),
            cost_estimate=pl.CostEstimate(
                flops=mlp_flops,
                transcendentals=B * N * Dm,
                bytes_accessed=(2 * 4 * B * N * D + 2 * D * Dm * it
                                + (Dm + D) * 4 + 3 * B * D * 4)),
        )(x1, shift_mlp, scale_mlp, gate_mlp, w_fc1, b_fc1, w_fc2, b_fc2)
    else:
        TDm = _pick_tile(Dm, (1024, 512, 256, 128))
        ndm = Dm // TDm
        out = pl.pallas_call(
            partial(mlp_kernel_tiled, mxu_dtype=mxu_dtype),
            out_shape=jax.ShapeDtypeStruct((B, N, D), x.dtype),
            grid=(B, nq, ndm),
            in_specs=[
                pl.BlockSpec((1, TQ, D), lambda b, i, j: (b, i, 0)),
                mod3, mod3, mod3,
                pl.BlockSpec((D, TDm), lambda b, i, j: (0, j)),
                pl.BlockSpec((1, TDm), lambda b, i, j: (0, j)),
                pl.BlockSpec((TDm, D), lambda b, i, j: (j, 0)),
                _wspec((1, D), lambda b, i, j: (0, 0)),
            ],
            out_specs=pl.BlockSpec((1, TQ, D), lambda b, i, j: (b, i, 0)),
            scratch_shapes=[
                pltpu.VMEM((TQ, D), mxu_dtype),      # modulate(norm2(x1)) cache
                pltpu.VMEM((TQ, D), jnp.float32),    # fc2 accumulator
            ],
            compiler_params=pltpu.CompilerParams(
                dimension_semantics=("parallel", "parallel", "arbitrary"),
                vmem_limit_bytes=budget),
            cost_estimate=pl.CostEstimate(
                flops=mlp_flops,
                transcendentals=B * N * Dm,
                bytes_accessed=(2 * 4 * B * N * D
                                + B * nq * 2 * D * Dm * it   # streamed weight traffic
                                + (Dm + D) * 4 + 3 * B * D * 4)),
        )(x1, shift_mlp, scale_mlp, gate_mlp, w_fc1, b_fc1, w_fc2, b_fc2)

    return out


# ---------------- pure-JAX reference (mirrors the PyTorch forward) ----------------
def dit_block_ref(x, c, p, H):
    B, N, D = x.shape
    hd = D // H
    ada = jax.nn.silu(c) @ p["w_ada"] + p["b_ada"][0]                 # (B, 6D)
    (shift_msa, scale_msa, gate_msa,
     shift_mlp, scale_mlp, gate_mlp) = jnp.split(ada, 6, axis=1)

    def modulate(y, shift, scale):
        return y * (1.0 + scale[:, None, :]) + shift[:, None, :]

    h = modulate(_layernorm(x), shift_msa, scale_msa)
    qkv = h @ p["w_qkv"] + p["b_qkv"][0]                              # (B, N, 3D)
    qkv = qkv.reshape(B, N, 3, H, hd).transpose(2, 0, 3, 1, 4)        # (3,B,H,N,hd)
    q, k, v = qkv[0], qkv[1], qkv[2]
    s = jnp.einsum("bhnd,bhmd->bhnm", q, k) * (hd ** -0.5)
    a = jax.nn.softmax(s, axis=-1)
    o = jnp.einsum("bhnm,bhmd->bhnd", a, v).transpose(0, 2, 1, 3).reshape(B, N, D)
    attn = o @ p["w_proj"] + p["b_proj"][0]
    x = x + gate_msa[:, None, :] * attn

    h2 = modulate(_layernorm(x), shift_mlp, scale_mlp)
    h2 = h2 @ p["w_fc1"] + p["b_fc1"][0]
    h2 = _gelu_tanh(h2)
    h2 = h2 @ p["w_fc2"] + p["b_fc2"][0]
    return x + gate_mlp[:, None, :] * h2


if __name__ == "__main__":
    B, N, D, H = 2, 8, 32, 4          # batch, tokens, hidden, heads
    Dm = int(D * 4.0)                 # mlp_ratio = 4.0

    key = jax.random.PRNGKey(0)
    ks = jax.random.split(key, 12)
    sd = 0.02
    params = {
        # weights stored pre-transposed as (in, out) so kernels do x @ W + b
        "w_ada":  sd * jax.random.normal(ks[0], (D, 6 * D), jnp.float32),
        "b_ada":  sd * jax.random.normal(ks[1], (1, 6 * D), jnp.float32),
        "w_qkv":  sd * jax.random.normal(ks[2], (D, 3 * D), jnp.float32),
        "b_qkv":  sd * jax.random.normal(ks[3], (1, 3 * D), jnp.float32),
        "w_proj": sd * jax.random.normal(ks[4], (D, D), jnp.float32),
        "b_proj": sd * jax.random.normal(ks[5], (1, D), jnp.float32),
        "w_fc1":  sd * jax.random.normal(ks[6], (D, Dm), jnp.float32),
        "b_fc1":  sd * jax.random.normal(ks[7], (1, Dm), jnp.float32),
        "w_fc2":  sd * jax.random.normal(ks[8], (Dm, D), jnp.float32),
        "b_fc2":  sd * jax.random.normal(ks[9], (1, D), jnp.float32),
    }
    x = jax.random.normal(ks[10], (B, N, D), jnp.float32)
    c = jax.random.normal(ks[11], (B, D), jnp.float32)

    ref = dit_block_ref(x, c, params, H)

    # perf path: bf16 MXU operands, approx reciprocal, resident MLP weights
    out = jax.block_until_ready(dit_block(x, c, params, num_heads=H))
    assert out.shape == (B, N, D)
    err_bf16 = float(jnp.max(jnp.abs(out.astype(jnp.float32) - ref)))
    assert err_bf16 < 2e-2, f"bf16 path max abs err {err_bf16}"

    # reference-precision path: f32 MXU, exact reciprocal, Dm-tiled MLP fallback
    out32 = jax.block_until_ready(
        dit_block(x, c, params, num_heads=H,
                  mxu_dtype=jnp.float32, mlp_resident=False))
    err_f32 = float(jnp.max(jnp.abs(out32 - ref)))
    assert err_f32 < 1e-4, f"f32 path max abs err {err_f32}"

    print("KERNEL_OK")
</pallas_src>

<mosaic_0001>
module attributes {stable_mosaic.version = 11 : i64} {
  func.func @qkv_kernel(%arg0: i32, %arg1: i32, %arg2: memref<1x8x32xf32, #tpu.memory_space<vmem>>, %arg3: memref<1x1x32xf32, #tpu.memory_space<vmem>>, %arg4: memref<1x1x32xf32, #tpu.memory_space<vmem>>, %arg5: memref<32x32xbf16, #tpu.memory_space<vmem>>, %arg6: memref<32x32xbf16, #tpu.memory_space<vmem>>, %arg7: memref<32x32xbf16, #tpu.memory_space<vmem>>, %arg8: memref<1x32xf32, #tpu.memory_space<vmem>>, %arg9: memref<1x32xf32, #tpu.memory_space<vmem>>, %arg10: memref<1x32xf32, #tpu.memory_space<vmem>>, %arg11: memref<1x4x8x8xbf16, #tpu.memory_space<vmem>>, %arg12: memref<1x4x8x8xbf16, #tpu.memory_space<vmem>>, %arg13: memref<1x4x8x8xbf16, #tpu.memory_space<vmem>>) attributes {dimension_semantics = [#tpu.dimension_semantics<parallel>, #tpu.dimension_semantics<parallel>], iteration_bounds = array<i64: 2, 1>, scalar_prefetch = 0 : i64, scratch_operands = 0 : i64, tpu.core_type = #tpu.core_type<tc>, window_params = [{transform_indices = @transform_0, window_bounds = array<i64: 1, 8, 32>}, {transform_indices = @transform_1, window_bounds = array<i64: 1, 1, 32>}, {transform_indices = @transform_2, window_bounds = array<i64: 1, 1, 32>}, {pipeline_mode = #tpu.pipeline_mode<synchronous>, transform_indices = @transform_3, window_bounds = array<i64: 32, 32>}, {pipeline_mode = #tpu.pipeline_mode<synchronous>, transform_indices = @transform_4, window_bounds = array<i64: 32, 32>}, {pipeline_mode = #tpu.pipeline_mode<synchronous>, transform_indices = @transform_5, window_bounds = array<i64: 32, 32>}, {pipeline_mode = #tpu.pipeline_mode<synchronous>, transform_indices = @transform_6, window_bounds = array<i64: 1, 32>}, {pipeline_mode = #tpu.pipeline_mode<synchronous>, transform_indices = @transform_7, window_bounds = array<i64: 1, 32>}, {pipeline_mode = #tpu.pipeline_mode<synchronous>, transform_indices = @transform_8, window_bounds = array<i64: 1, 32>}, {transform_indices = @transform_9, window_bounds = array<i64: 1, 4, 8, 8>}, {transform_indices = @transform_10, window_bounds = array<i64: 1, 4, 8, 8>}, {transform_indices = @transform_11, window_bounds = array<i64: 1, 4, 8, 8>}]} {
    %c0 = arith.constant 0 : index
    %c0_0 = arith.constant 0 : index
    %c0_1 = arith.constant 0 : index
    %0 = vector.load %arg2[%c0, %c0_0, %c0_1] : memref<1x8x32xf32, #tpu.memory_space<vmem>>, vector<1x8x32xf32>
    %1 = vector.shape_cast %0 : vector<1x8x32xf32> to vector<8x32xf32>
    %cst = arith.constant dense<0.000000e+00> : vector<8xf32>
    %2 = vector.multi_reduction <add>, %1, %cst [1] : vector<8x32xf32> to vector<8xf32>
    %3 = vector.shape_cast %2 : vector<8xf32> to vector<8x1xf32>
    %cst_2 = arith.constant 3.200000e+01 : f32
    %4 = vector.broadcast %cst_2 : f32 to vector<8x1xf32>
    %5 = arith.divf %3, %4 : vector<8x1xf32>
    %6 = vector.broadcast %5 : vector<8x1xf32> to vector<8x32xf32>
    %7 = arith.subf %1, %6 : vector<8x32xf32>
    %8 = arith.mulf %7, %7 : vector<8x32xf32>
    %cst_3 = arith.constant dense<0.000000e+00> : vector<8xf32>
    %9 = vector.multi_reduction <add>, %8, %cst_3 [1] : vector<8x32xf32> to vector<8xf32>
    %10 = vector.shape_cast %9 : vector<8xf32> to vector<8x1xf32>
    %cst_4 = arith.constant 3.200000e+01 : f32
    %11 = vector.broadcast %cst_4 : f32 to vector<8x1xf32>
    %12 = arith.divf %10, %11 : vector<8x1xf32>
    %13 = vector.broadcast %5 : vector<8x1xf32> to vector<8x32xf32>
    %14 = arith.subf %1, %13 : vector<8x32xf32>
    %cst_5 = arith.constant 9.99999997E-7 : f32
    %15 = vector.broadcast %cst_5 : f32 to vector<8x1xf32>
    %16 = arith.addf %12, %15 : vector<8x1xf32>
    %17 = math.rsqrt %16 : vector<8x1xf32>
    %18 = vector.broadcast %17 : vector<8x1xf32> to vector<8x32xf32>
    %19 = arith.mulf %14, %18 : vector<8x32xf32>
    %c0_6 = arith.constant 0 : index
    %c0_7 = arith.constant 0 : index
    %c0_8 = arith.constant 0 : index
    %20 = vector.load %arg4[%c0_6, %c0_7, %c0_8] : memref<1x1x32xf32, #tpu.memory_space<vmem>>, vector<1x1x32xf32>
    %21 = vector.shape_cast %20 : vector<1x1x32xf32> to vector<1x32xf32>
    %cst_9 = arith.constant 1.000000e+00 : f32
    %22 = vector.broadcast %cst_9 : f32 to vector<1x32xf32>
    %23 = arith.addf %22, %21 : vector<1x32xf32>
    %24 = vector.broadcast %23 : vector<1x32xf32> to vector<8x32xf32>
    %25 = arith.mulf %19, %24 : vector<8x32xf32>
    %c0_10 = arith.constant 0 : index
    %c0_11 = arith.constant 0 : index
    %c0_12 = arith.constant 0 : index
    %26 = vector.load %arg3[%c0_10, %c0_11, %c0_12] : memref<1x1x32xf32, #tpu.memory_space<vmem>>, vector<1x1x32xf32>
    %27 = vector.shape_cast %26 : vector<1x1x32xf32> to vector<1x32xf32>
    %28 = vector.broadcast %27 : vector<1x32xf32> to vector<8x32xf32>
    %29 = arith.addf %25, %28 : vector<8x32xf32>
    %30 = arith.truncf %29 : vector<8x32xf32> to vector<8x32xbf16>
    %c0_13 = arith.constant 0 : index
    %c0_14 = arith.constant 0 : index
    %31 = vector.load %arg5[%c0_13, %c0_14] : memref<32x32xbf16, #tpu.memory_space<vmem>>, vector<32x32xbf16>
    %cst_15 = arith.constant dense<0.000000e+00> : vector<8x32xf32>
    %32 = tpu.matmul %30, %31, %cst_15 {dimension_numbers = #tpu.dot_dimension_numbers<[1], [0], [0], [1], [0, 0, 1, 1], [], []>} : vector<8x32xbf16>, vector<32x32xbf16>, vector<8x32xf32> -> vector<8x32xf32>
    %c0_16 = arith.constant 0 : index
    %c0_17 = arith.constant 0 : index
    %33 = vector.load %arg8[%c0_16, %c0_17] : memref<1x32xf32, #tpu.memory_space<vmem>>, vector<1x32xf32>
    %34 = vector.broadcast %33 : vector<1x32xf32> to vector<8x32xf32>
    %35 = arith.addf %32, %34 : vector<8x32xf32>
    %c0_18 = arith.constant 0 : index
    %c0_19 = arith.constant 0 : index
    %36 = vector.load %arg6[%c0_18, %c0_19] : memref<32x32xbf16, #tpu.memory_space<vmem>>, vector<32x32xbf16>
    %cst_20 = arith.constant dense<0.000000e+00> : vector<8x32xf32>
    %37 = tpu.matmul %30, %36, %cst_20 {dimension_numbers = #tpu.dot_dimension_numbers<[1], [0], [0], [1], [0, 0, 1, 1], [], []>} : vector<8x32xbf16>, vector<32x32xbf16>, vector<8x32xf32> -> vector<8x32xf32>
    %c0_21 = arith.constant 0 : index
    %c0_22 = arith.constant 0 : index
    %38 = vector.load %arg9[%c0_21, %c0_22] : memref<1x32xf32, #tpu.memory_space<vmem>>, vector<1x32xf32>
    %39 = vector.broadcast %38 : vector<1x32xf32> to vector<8x32xf32>
    %40 = arith.addf %37, %39 : vector<8x32xf32>
    %c0_23 = arith.constant 0 : index
    %c0_24 = arith.constant 0 : index
    %41 = vector.load %arg7[%c0_23, %c0_24] : memref<32x32xbf16, #tpu.memory_space<vmem>>, vector<32x32xbf16>
    %cst_25 = arith.constant dense<0.000000e+00> : vector<8x32xf32>
    %42 = tpu.matmul %30, %41, %cst_25 {dimension_numbers = #tpu.dot_dimension_numbers<[1], [0], [0], [1], [0, 0, 1, 1], [], []>} : vector<8x32xbf16>, vector<32x32xbf16>, vector<8x32xf32> -> vector<8x32xf32>
    %c0_26 = arith.constant 0 : index
    %c0_27 = arith.constant 0 : index
    %43 = vector.load %arg10[%c0_26, %c0_27] : memref<1x32xf32, #tpu.memory_space<vmem>>, vector<1x32xf32>
    %44 = vector.broadcast %43 : vector<1x32xf32> to vector<8x32xf32>
    %45 = arith.addf %42, %44 : vector<8x32xf32>
    %46 = vector.extract_strided_slice %35 {offsets = [0, 0], sizes = [8, 8], strides = [1, 1]} : vector<8x32xf32> to vector<8x8xf32>
    %47 = arith.truncf %46 : vector<8x8xf32> to vector<8x8xbf16>
    %c0_28 = arith.constant 0 : index
    %c0_29 = arith.constant 0 : index
    %c0_30 = arith.constant 0 : index
    %c0_31 = arith.constant 0 : index
    %48 = vector.load %arg11[%c0_28, %c0_29, %c0_30, %c0_31] : memref<1x4x8x8xbf16, #tpu.memory_space<vmem>>, vector<1x1x8x8xbf16>
    %49 = vector.shape_cast %48 : vector<1x1x8x8xbf16> to vector<8x8xbf16>
    %50 = vector.shape_cast %47 : vector<8x8xbf16> to vector<1x1x8x8xbf16>
    tpu.vector_store %arg11[%c0_28, %c0_29, %c0_30, %c0_31], %50 {strides = array<i32>} : memref<1x4x8x8xbf16, #tpu.memory_space<vmem>>, vector<1x1x8x8xbf16>,
    %51 = vector.extract_strided_slice %40 {offsets = [0, 0], sizes = [8, 8], strides = [1, 1]} : vector<8x32xf32> to vector<8x8xf32>
    %52 = arith.truncf %51 : vector<8x8xf32> to vector<8x8xbf16>
    %c0_32 = arith.constant 0 : index
    %c0_33 = arith.constant 0 : index
    %c0_34 = arith.constant 0 : index
    %c0_35 = arith.constant 0 : index
    %53 = vector.load %arg12[%c0_32, %c0_33, %c0_34, %c0_35] : memref<1x4x8x8xbf16, #tpu.memory_space<vmem>>, vector<1x1x8x8xbf16>
    %54 = vector.shape_cast %53 : vector<1x1x8x8xbf16> to vector<8x8xbf16>
    %55 = vector.shape_cast %52 : vector<8x8xbf16> to vector<1x1x8x8xbf16>
    tpu.vector_store %arg12[%c0_32, %c0_33, %c0_34, %c0_35], %55 {strides = array<i32>} : memref<1x4x8x8xbf16, #tpu.memory_space<vmem>>, vector<1x1x8x8xbf16>,
    %56 = vector.extract_strided_slice %45 {offsets = [0, 0], sizes = [8, 8], strides = [1, 1]} : vector<8x32xf32> to vector<8x8xf32>
    %57 = arith.truncf %56 : vector<8x8xf32> to vector<8x8xbf16>
    %c0_36 = arith.constant 0 : index
    %c0_37 = arith.constant 0 : index
    %c0_38 = arith.constant 0 : index
    %c0_39 = arith.constant 0 : index
    %58 = vector.load %arg13[%c0_36, %c0_37, %c0_38, %c0_39] : memref<1x4x8x8xbf16, #tpu.memory_space<vmem>>, vector<1x1x8x8xbf16>
    %59 = vector.shape_cast %58 : vector<1x1x8x8xbf16> to vector<8x8xbf16>
    %60 = vector.shape_cast %57 : vector<8x8xbf16> to vector<1x1x8x8xbf16>
    tpu.vector_store %arg13[%c0_36, %c0_37, %c0_38, %c0_39], %60 {strides = array<i32>} : memref<1x4x8x8xbf16, #tpu.memory_space<vmem>>, vector<1x1x8x8xbf16>,
    %61 = vector.extract_strided_slice %35 {offsets = [0, 8], sizes = [8, 8], strides = [1, 1]} : vector<8x32xf32> to vector<8x8xf32>
    %62 = arith.truncf %61 : vector<8x8xf32> to vector<8x8xbf16>
    %c0_40 = arith.constant 0 : index
    %c1 = arith.constant 1 : index
    %c0_41 = arith.constant 0 : index
    %c0_42 = arith.constant 0 : index
    %63 = vector.load %arg11[%c0_40, %c1, %c0_41, %c0_42] : memref<1x4x8x8xbf16, #tpu.memory_space<vmem>>, vector<1x1x8x8xbf16>
    %64 = vector.shape_cast %63 : vector<1x1x8x8xbf16> to vector<8x8xbf16>
    %65 = vector.shape_cast %62 : vector<8x8xbf16> to vector<1x1x8x8xbf16>
    tpu.vector_store %arg11[%c0_40, %c1, %c0_41, %c0_42], %65 {strides = array<i32>} : memref<1x4x8x8xbf16, #tpu.memory_space<vmem>>, vector<1x1x8x8xbf16>,
    %66 = vector.extract_strided_slice %40 {offsets = [0, 8], sizes = [8, 8], strides = [1, 1]} : vector<8x32xf32> to vector<8x8xf32>
    %67 = arith.truncf %66 : vector<8x8xf32> to vector<8x8xbf16>
    %c0_43 = arith.constant 0 : index
    %c1_44 = arith.constant 1 : index
    %c0_45 = arith.constant 0 : index
    %c0_46 = arith.constant 0 : index
    %68 = vector.load %arg12[%c0_43, %c1_44, %c0_45, %c0_46] : memref<1x4x8x8xbf16, #tpu.memory_space<vmem>>, vector<1x1x8x8xbf16>
    %69 = vector.shape_cast %68 : vector<1x1x8x8xbf16> to vector<8x8xbf16>
    %70 = vector.shape_cast %67 : vector<8x8xbf16> to vector<1x1x8x8xbf16>
    tpu.vector_store %arg12[%c0_43, %c1_44, %c0_45, %c0_46], %70 {strides = array<i32>} : memref<1x4x8x8xbf16, #tpu.memory_space<vmem>>, vector<1x1x8x8xbf16>,
    %71 = vector.extract_strided_slice %45 {offsets = [0, 8], sizes = [8, 8], strides = [1, 1]} : vector<8x32xf32> to vector<8x8xf32>
    %72 = arith.truncf %71 : vector<8x8xf32> to vector<8x8xbf16>
    %c0_47 = arith.constant 0 : index
    %c1_48 = arith.constant 1 : index
    %c0_49 = arith.constant 0 : index
    %c0_50 = arith.constant 0 : index
    %73 = vector.load %arg13[%c0_47, %c1_48, %c0_49, %c0_50] : memref<1x4x8x8xbf16, #tpu.memory_space<vmem>>, vector<1x1x8x8xbf16>
    %74 = vector.shape_cast %73 : vector<1x1x8x8xbf16> to vector<8x8xbf16>
    %75 = vector.shape_cast %72 : vector<8x8xbf16> to vector<1x1x8x8xbf16>
    tpu.vector_store %arg13[%c0_47, %c1_48, %c0_49, %c0_50], %75 {strides = array<i32>} : memref<1x4x8x8xbf16, #tpu.memory_space<vmem>>, vector<1x1x8x8xbf16>,
    %76 = vector.extract_strided_slice %35 {offsets = [0, 16], sizes = [8, 8], strides = [1, 1]} : vector<8x32xf32> to vector<8x8xf32>
    %77 = arith.truncf %76 : vector<8x8xf32> to vector<8x8xbf16>
    %c0_51 = arith.constant 0 : index
    %c2 = arith.constant 2 : index
    %c0_52 = arith.constant 0 : index
    %c0_53 = arith.constant 0 : index
    %78 = vector.load %arg11[%c0_51, %c2, %c0_52, %c0_53] : memref<1x4x8x8xbf16, #tpu.memory_space<vmem>>, vector<1x1x8x8xbf16>
    %79 = vector.shape_cast %78 : vector<1x1x8x8xbf16> to vector<8x8xbf16>
    %80 = vector.shape_cast %77 : vector<8x8xbf16> to vector<1x1x8x8xbf16>
    tpu.vector_store %arg11[%c0_51, %c2, %c0_52, %c0_53], %80 {strides = array<i32>} : memref<1x4x8x8xbf16, #tpu.memory_space<vmem>>, vector<1x1x8x8xbf16>,
    %81 = vector.extract_strided_slice %40 {offsets = [0, 16], sizes = [8, 8], strides = [1, 1]} : vector<8x32xf32> to vector<8x8xf32>
    %82 = arith.truncf %81 : vector<8x8xf32> to vector<8x8xbf16>
    %c0_54 = arith.constant 0 : index
    %c2_55 = arith.constant 2 : index
    %c0_56 = arith.constant 0 : index
    %c0_57 = arith.constant 0 : index
    %83 = vector.load %arg12[%c0_54, %c2_55, %c0_56, %c0_57] : memref<1x4x8x8xbf16, #tpu.memory_space<vmem>>, vector<1x1x8x8xbf16>
    %84 = vector.shape_cast %83 : vector<1x1x8x8xbf16> to vector<8x8xbf16>
    %85 = vector.shape_cast %82 : vector<8x8xbf16> to vector<1x1x8x8xbf16>
    tpu.vector_store %arg12[%c0_54, %c2_55, %c0_56, %c0_57], %85 {strides = array<i32>} : memref<1x4x8x8xbf16, #tpu.memory_space<vmem>>, vector<1x1x8x8xbf16>,
    %86 = vector.extract_strided_slice %45 {offsets = [0, 16], sizes = [8, 8], strides = [1, 1]} : vector<8x32xf32> to vector<8x8xf32>
    %87 = arith.truncf %86 : vector<8x8xf32> to vector<8x8xbf16>
    %c0_58 = arith.constant 0 : index
    %c2_59 = arith.constant 2 : index
    %c0_60 = arith.constant 0 : index
    %c0_61 = arith.constant 0 : index
    %88 = vector.load %arg13[%c0_58, %c2_59, %c0_60, %c0_61] : memref<1x4x8x8xbf16, #tpu.memory_space<vmem>>, vector<1x1x8x8xbf16>
    %89 = vector.shape_cast %88 : vector<1x1x8x8xbf16> to vector<8x8xbf16>
    %90 = vector.shape_cast %87 : vector<8x8xbf16> to vector<1x1x8x8xbf16>
    tpu.vector_store %arg13[%c0_58, %c2_59, %c0_60, %c0_61], %90 {strides = array<i32>} : memref<1x4x8x8xbf16, #tpu.memory_space<vmem>>, vector<1x1x8x8xbf16>,
    %91 = vector.extract_strided_slice %35 {offsets = [0, 24], sizes = [8, 8], strides = [1, 1]} : vector<8x32xf32> to vector<8x8xf32>
    %92 = arith.truncf %91 : vector<8x8xf32> to vector<8x8xbf16>
    %c0_62 = arith.constant 0 : index
    %c3 = arith.constant 3 : index
    %c0_63 = arith.constant 0 : index
    %c0_64 = arith.constant 0 : index
    %93 = vector.load %arg11[%c0_62, %c3, %c0_63, %c0_64] : memref<1x4x8x8xbf16, #tpu.memory_space<vmem>>, vector<1x1x8x8xbf16>
    %94 = vector.shape_cast %93 : vector<1x1x8x8xbf16> to vector<8x8xbf16>
    %95 = vector.shape_cast %92 : vector<8x8xbf16> to vector<1x1x8x8xbf16>
    tpu.vector_store %arg11[%c0_62, %c3, %c0_63, %c0_64], %95 {strides = array<i32>} : memref<1x4x8x8xbf16, #tpu.memory_space<vmem>>, vector<1x1x8x8xbf16>,
    %96 = vector.extract_strided_slice %40 {offsets = [0, 24], sizes = [8, 8], strides = [1, 1]} : vector<8x32xf32> to vector<8x8xf32>
    %97 = arith.truncf %96 : vector<8x8xf32> to vector<8x8xbf16>
    %c0_65 = arith.constant 0 : index
    %c3_66 = arith.constant 3 : index
    %c0_67 = arith.constant 0 : index
    %c0_68 = arith.constant 0 : index
    %98 = vector.load %arg12[%c0_65, %c3_66, %c0_67, %c0_68] : memref<1x4x8x8xbf16, #tpu.memory_space<vmem>>, vector<1x1x8x8xbf16>
    %99 = vector.shape_cast %98 : vector<1x1x8x8xbf16> to vector<8x8xbf16>
    %100 = vector.shape_cast %97 : vector<8x8xbf16> to vector<1x1x8x8xbf16>
    tpu.vector_store %arg12[%c0_65, %c3_66, %c0_67, %c0_68], %100 {strides = array<i32>} : memref<1x4x8x8xbf16, #tpu.memory_space<vmem>>, vector<1x1x8x8xbf16>,
    %101 = vector.extract_strided_slice %45 {offsets = [0, 24], sizes = [8, 8], strides = [1, 1]} : vector<8x32xf32> to vector<8x8xf32>
    %102 = arith.truncf %101 : vector<8x8xf32> to vector<8x8xbf16>
    %c0_69 = arith.constant 0 : index
    %c3_70 = arith.constant 3 : index
    %c0_71 = arith.constant 0 : index
    %c0_72 = arith.constant 0 : index
    %103 = vector.load %arg13[%c0_69, %c3_70, %c0_71, %c0_72] : memref<1x4x8x8xbf16, #tpu.memory_space<vmem>>, vector<1x1x8x8xbf16>
    %104 = vector.shape_cast %103 : vector<1x1x8x8xbf16> to vector<8x8xbf16>
    %105 = vector.shape_cast %102 : vector<8x8xbf16> to vector<1x1x8x8xbf16>
    tpu.vector_store %arg13[%c0_69, %c3_70, %c0_71, %c0_72], %105 {strides = array<i32>} : memref<1x4x8x8xbf16, #tpu.memory_space<vmem>>, vector<1x1x8x8xbf16>,
    return
  }
  func.func @transform_0(%arg0: i32, %arg1: i32) -> (i32, i32, i32) {
    %c0_i32 = arith.constant 0 : i32
    %c0_i32_0 = arith.constant 0 : i32
    return %arg0, %arg1, %c0_i32 : i32, i32, i32
  }
  func.func @transform_1(%arg0: i32, %arg1: i32) -> (i32, i32, i32) {
    %c0_i32 = arith.constant 0 : i32
    %c0_i32_0 = arith.constant 0 : i32
    %c0_i32_1 = arith.constant 0 : i32
    return %arg0, %c0_i32, %c0_i32_0 : i32, i32, i32
  }
  func.func @transform_2(%arg0: i32, %arg1: i32) -> (i32, i32, i32) {
    %c0_i32 = arith.constant 0 : i32
    %c0_i32_0 = arith.constant 0 : i32
    %c0_i32_1 = arith.constant 0 : i32
    return %arg0, %c0_i32, %c0_i32_0 : i32, i32, i32
  }
  func.func @transform_3(%arg0: i32, %arg1: i32) -> (i32, i32) {
    %c0_i32 = arith.constant 0 : i32
    %c0_i32_0 = arith.constant 0 : i32
    %c0_i32_1 = arith.constant 0 : i32
    return %c0_i32, %c0_i32_0 : i32, i32
  }
  func.func @transform_4(%arg0: i32, %arg1: i32) -> (i32, i32) {
    %c0_i32 = arith.constant 0 : i32
    %c0_i32_0 = arith.constant 0 : i32
    %c0_i32_1 = arith.constant 0 : i32
    return %c0_i32, %c0_i32_0 : i32, i32
  }
  func.func @transform_5(%arg0: i32, %arg1: i32) -> (i32, i32) {
    %c0_i32 = arith.constant 0 : i32
    %c0_i32_0 = arith.constant 0 : i32
    %c0_i32_1 = arith.constant 0 : i32
    return %c0_i32, %c0_i32_0 : i32, i32
  }
  func.func @transform_6(%arg0: i32, %arg1: i32) -> (i32, i32) {
    %c0_i32 = arith.constant 0 : i32
    %c0_i32_0 = arith.constant 0 : i32
    %c0_i32_1 = arith.constant 0 : i32
    return %c0_i32, %c0_i32_0 : i32, i32
  }
  func.func @transform_7(%arg0: i32, %arg1: i32) -> (i32, i32) {
    %c0_i32 = arith.constant 0 : i32
    %c0_i32_0 = arith.constant 0 : i32
    %c0_i32_1 = arith.constant 0 : i32
    return %c0_i32, %c0_i32_0 : i32, i32
  }
  func.func @transform_8(%arg0: i32, %arg1: i32) -> (i32, i32) {
    %c0_i32 = arith.constant 0 : i32
    %c0_i32_0 = arith.constant 0 : i32
    %c0_i32_1 = arith.constant 0 : i32
    return %c0_i32, %c0_i32_0 : i32, i32
  }
  func.func @transform_9(%arg0: i32, %arg1: i32) -> (i32, i32, i32, i32) {
    %c0_i32 = arith.constant 0 : i32
    %c0_i32_0 = arith.constant 0 : i32
    %c0_i32_1 = arith.constant 0 : i32
    return %arg0, %c0_i32, %arg1, %c0_i32_0 : i32, i32, i32, i32
  }
  func.func @transform_10(%arg0: i32, %arg1: i32) -> (i32, i32, i32, i32) {
    %c0_i32 = arith.constant 0 : i32
    %c0_i32_0 = arith.constant 0 : i32
    %c0_i32_1 = arith.constant 0 : i32
    return %arg0, %c0_i32, %arg1, %c0_i32_0 : i32, i32, i32, i32
  }
  func.func @transform_11(%arg0: i32, %arg1: i32) -> (i32, i32, i32, i32) {
    %c0_i32 = arith.constant 0 : i32
    %c0_i32_0 = arith.constant 0 : i32
    %c0_i32_1 = arith.constant 0 : i32
    return %arg0, %c0_i32, %arg1, %c0_i32_0 : i32, i32, i32, i32
  }
}

</mosaic_0001>

<bundles_post_ra>
// kernel: tpu_custom_call.1
= control target key start
LH: loop header
LB: loop body
LE: loop exit
PB: predicated region body
PF: predicated region fallthrough
CT: control target
= control target key end

     0   :  { %s1970_s0 = inlined_call_operand.hbm [shape: f32[2,8,32], index: 0, kind: input, shape index: {}]   ;;  %s1971_s1 = inlined_call_operand.hbm [shape: f32[2,1,32], index: 1, kind: input, shape index: {}]   ;;  %s1972_s2 = inlined_call_operand.hbm [shape: f32[2,1,32], index: 2, kind: input, shape index: {}]   ;;  %s1973_s3 = inlined_call_operand.hbm [shape: bf16[32,32], index: 3, kind: input, shape index: {}]   ;;  %s1974_s4 = inlined_call_operand.hbm [shape: bf16[32,32], index: 4, kind: input, shape index: {}]   ;;  %s1975_s5 = inlined_call_operand.hbm [shape: bf16[32,32], index: 5, kind: input, shape index: {}]   ;;  %s1976_s6 = inlined_call_operand.vmem [shape: f32[1,32], index: 6, kind: input, shape index: {}]   ;;  %s1977_s7 = inlined_call_operand.vmem [shape: f32[1,32], index: 7, kind: input, shape index: {}]   ;;  %s1978_s8 = inlined_call_operand.vmem [shape: f32[1,32], index: 8, kind: input, shape index: {}]   ;;  %s1979_s9 = inlined_call_operand.hbm [shape: bf16[2,4,8,8], index: 9, kind: output, shape index: {0}]   ;;  %s1980_s10 = inlined_call_operand.hbm [shape: bf16[2,4,8,8], index: 10, kind: output, shape index: {1}]   ;;  %s1981_s11 = inlined_call_operand.hbm [shape: bf16[2,4,8,8], index: 11, kind: output, shape index: {2}]  }
   0x1   :  { %1997 = sst [smem:[#allocation30_spill]] %s1971_s1 }
   0x2   :  { %1998 = sst [smem:[#allocation31_spill]] %s1973_s3 }
   0x3   :  { %1999 = sst [smem:[#allocation32_spill]] %s1974_s4 }
   0x4   :  { %2000 = sst [smem:[#allocation33_spill]] %s1975_s5 }
   0x5   :  { %2001 = sst [smem:[#allocation34_spill]] %s1979_s9 }
   0x6   :  { %2002 = sst [smem:[#allocation35_spill]] %s1981_s11 }
   0x7   :  { %17 = vsyncpa [#allocation3], 0 }
   0x8   :  { %19 = vsyncpa [#allocation3 + $0x1], 0 }
   0x9   :  { %20 = vsyncpa [#allocation6], 0 }
   0xa   :  { %22 = vsyncpa [#allocation6 + $0x1], 0 }
   0xb   :  { %23 = vsyncpa [#allocation9], 0 }
   0xc   :  { %24 = vsyncpa [#allocation12], 0 }
   0xd   :  { %25 = vsyncpa [#allocation4], 0 }
   0xe   :  { %27 = vsyncpa [#allocation4 + $0x1], 0 }
   0xf   :  { %28 = vsyncpa [#allocation15], 0 }
  0x10   :  { %30 = vsyncpa [#allocation15 + $0x1], 0  ;;  %s1648_s17 = smov 0   ;;  %s1650_s18 = smov 0  }
  0x11   :  { %s1652_s19 = smov 0   ;;  %s1654_s20 = smov 0  }
  0x12   :  { %s1656_s21 = smov 0   ;;  %s1658_s22 = smov 0  }
  0x13 LB: > { %2003 = sst [smem:[#allocation23_spill]] %s1555_s17  ;;  %s1679_s23 = sadd.s32 4294967295, %s1575_s22   ;;  %s1575_s22 = sphi %s1658_s22, %s36_s22   ;;  %s1571_s21 = sphi %s1656_s21, %s2036_s21   ;;  %s1567_s20 = sphi %s1654_s20, %s2035_s20   ;;  %s1563_s19 = sphi %s1652_s19, %s2031_s19   ;;  %s1559_s18 = sphi %s1650_s18, %s2034_s18   ;;  %s1555_s17 = sphi %s1648_s17, %s2033_s17  }
  0x14   : > { %2004 = sst [smem:[#allocation24_spill]] %s1563_s19  ;;  %p1041_p0 = scmp.ge.s32.totalorder %s1575_s22, 1 }
  0x15   : > { %2005 = sst [smem:[#allocation25_spill]] %s1575_s22  ;;  %p71_p1 = scmp.eq.s32.totalorder %s1679_s23, 0 }
  0x16   : > { %p343_p2 = scmp.lt.s32.totalorder %s1575_s22, 3  ;;  %s2006_s3 = sld [smem:[#allocation31_spill]] }
  0x17   : > { %s1577_s28 = smov [#allocation8]   ;;  %s1982_s12 = smov 64  }
  0x18   : > { %p1687_p3 = pnand %p1041_p0, %p343_p2  ;;  %s356_s29 = sshll.u32 %s1577_s28, 4  ;;  %s357_s29 = int_to_ptr.vmem [resolvable:$true] %s356_s29 }
  0x19   : > { %s1984_s13 = smov 4   ;;  %s1986_s14 = sadd.s32 4294967294, %s1575_s22  }
  0x1a   : > { %p1136_p4 = pneg %p1687_p3  ;;  %s48_s15 = sadd.s32 1, %s1571_s21 }
  0x1b   : > { %s57_s16 = sadd.s32 1, %s1563_s19  ;;  %p50_p7 = scmp.ge.s32.totalorder %s48_s15, 2 }
  0x1c   : > { %s354_s26 = sshll.u32 %s2006_s3, 4  ;;  %p1695_p5 = pnand %p1136_p4, %p71_p1  ;;  %s355_s26 = int_to_ptr.hbm [resolvable:$true] %s354_s26 }
  0x1d   : > { %p64_p8 = scmp.ne.s32.totalorder %s1563_s19, %s1559_s18  ;;  %p65_p9 = scmp.eq.s32.totalorder %s1575_s22, 0 }
  0x1e   : > { %1139 = dma.hbm_to_vmem [thread:$0]  (!%p1695_p5), %s355_s26, 256, %s357_s29, [#allocation9], %s1982_s12, %s1982_s12, %s1984_s13  }
  0x1f   : > { %p70_p10 = scmp.ne.s32.totalorder %s1559_s18, %s1555_s17  ;;  %s2038_s15 = smov (%p50_p7, %s48_s15), 0 }
  0x20   : > { %2009 = sst [smem:[#allocation26_spill]] %s2038_s15  ;;  %p66_p11 = por %p65_p9, %p64_p8 }
  0x21   : > { %p1717_p12 = por %p71_p1, %p70_p10  ;;  %s52_s25 = ssub.s32 %s1571_s21, %s2038_s15 }
  0x22   : > { %p274_p13 = scmp.eq.s32.totalorder %s1679_s23, 1  ;;  %p55_p0 = scmp.eq.s32.totalorder %s52_s25, 0 }
  0x23   : > { %p280_p2 = scmp.eq.s32.totalorder %s1986_s14, 1  ;;  %p1169_p6 = scmp.lt.s32.totalorder %s1575_s22, 2 }
  0x24   : > { %p1726_p4 = por %p274_p13, %p64_p8  ;;  %s1739_s12 = sand.u32 1, %s1563_s19  }
  0x25   : > { %s1732_s28 = scalar_select %p55_p0, %s1563_s19, %s57_s16  }
  0x26   : > { %s2011_s26 = scalar_select %p1726_p4, 1, 0 }
  0x27   : > { %2013 = sst [smem:[#allocation28_spill]] %s1732_s28  ;;  %p1734_p7 = por %p280_p2, %p70_p10 }
  0x28   : > { %2012 = sst [smem:[#allocation27_spill]] %s2011_s26  ;;  %p1741_p9 = pnand %p1169_p6, %p66_p11 }
  0x29   : > { %s2014_s29 = scalar_select %p1734_p7, 1, 0 }
  0x2a   : > { %s427_s25 = sand.u32 1, %s1575_s22   ;;  %s2017_s1 = sld [smem:[#allocation30_spill]] }
  0x2b   : > { %2015 = sst [smem:[#allocation29_spill]] %s2014_s29  ;;  %s430_s28 = scalar_lea.vmem [#allocation5], %s1739_s12 }
  0x2c   : > { %s437_s17 = sshll.u32 %s430_s28, 4  ;;  %s1751_s19 = scalar_lea.sflag [#allocation6], %s427_s25  ;;  %s438_s17 = int_to_ptr.vmem [resolvable:$true] %s437_s17 }
  0x2d   : > { %s2018_s4 = sld [smem:[#allocation32_spill]]  ;;  %s1580_s3 = smov [#allocation10]  }
  0x2e   : > { %s370_s14 = sshll.u32 %s1580_s3, 4  ;;  %s2019_s5 = sld [smem:[#allocation33_spill]]  ;;  %s371_s14 = int_to_ptr.vmem [resolvable:$true] %s370_s14 }
  0x2f   : > { %s2020_s26 = smov 4   ;;  %s2021_s25 = smov 64  }
  0x30   : > { %s433_s15 = scalar_lea.hbm %s2017_s1, %s1571_s21  ;;  %s1581_s9 = smov [#allocation11]  }
  0x31   : > { %s435_s16 = sshll.u32 %s433_s15, 4  ;;  %s1046_s29 = sshll.u32 %s1739_s12, 3  ;;  %s436_s16 = int_to_ptr.hbm [resolvable:$true] %s435_s16 }
  0x32   : > { %1152 = dma.hbm_to_vmem [thread:$0]  (!%p1741_p9), %s436_s16, 16, %s438_s17, %s1751_s19  }
  0x33   : > { %s368_s22 = sshll.u32 %s2018_s4, 4  ;;  %s384_s17 = sshll.u32 %s1581_s9, 4  ;;  %s369_s22 = int_to_ptr.hbm [resolvable:$true] %s368_s22  ;;  %s385_s17 = int_to_ptr.vmem [resolvable:$true] %s384_s17 }
  0x34   : > { %s382_s1 = sshll.u32 %s2019_s5, 4  ;;  %s1047_s16 = sshll.u32 %s1571_s21, 3  ;;  %s383_s1 = int_to_ptr.hbm [resolvable:$true] %s382_s1 }
  0x35   : > { %1142 = dma.hbm_to_vmem [thread:$0]  (!%p1695_p5), %s369_s22, 256, %s371_s14, [#allocation9], %s2021_s25, %s2021_s25, %s2020_s26  }
  0x36   : > { %1145 = dma.hbm_to_vmem [thread:$0]  (!%p1695_p5), %s383_s1, 256, %s385_s17, [#allocation12], %s2021_s25, %s2021_s25, %s2020_s26  }
  0x37   : > { %s416_s28 = scalar_lea.hbm %s1970_s0, %s1047_s16  ;;  %s411_s22 = scalar_lea.vmem [#allocation2], %s1046_s29 }
  0x38   : > { %s420_s14 = sshll.u32 %s411_s22, 4  ;;  %s418_s4 = sshll.u32 %s416_s28, 4  ;;  %s421_s14 = int_to_ptr.vmem [resolvable:$true] %s420_s14  ;;  %s419_s4 = int_to_ptr.hbm [resolvable:$true] %s418_s4 }
  0x39   : > { %s408_s9 = scalar_lea.sflag [#allocation3], %s1739_s12  ;;  %s450_s11 = scalar_lea.hbm %s1972_s2, %s1571_s21 }
  0x3a   : > { %1149 = dma.hbm_to_vmem [thread:$0]  (!%p1741_p9), %s419_s4, 128, %s421_s14, %s408_s9  }
  0x3b   : > { %s447_s1 = scalar_lea.vmem [#allocation7], %s1739_s12  ;;  %s452_s25 = sshll.u32 %s450_s11, 4  ;;  %s453_s25 = int_to_ptr.hbm [resolvable:$true] %s452_s25 }
  0x3c   : > { %s454_s26 = sshll.u32 %s447_s1, 4  ;;  %463 = sbr.rel (%p1687_p3) target bundleno = 633 (0x279), region = 56  ;;  %s455_s26 = int_to_ptr.vmem [resolvable:$true] %s454_s26 }
  0x3d   : > { %1155 = dma.hbm_to_vmem [thread:$0]  (!%p1741_p9), %s453_s25, 16, %s455_s26, %s1751_s19  }
  0x3e   : > { %s1791_s17 = sand.u32 (!%p1687_p3), 1, %s1559_s18  }
  0x3f   : > { %s1049_s4 = sshll.u32 (!%p1687_p3), %s1791_s17, 3  ;;  %s466_s29 = scalar_lea.sflag (!%p1687_p3), [#allocation3], %s1791_s17 }
  0x40   : > { %s469_s5 = scalar_lea.vmem (!%p1687_p3), [#allocation2], %s1049_s4 }
  0x41   : > { %1530 = dma.done.wait (%p1717_p12), %s466_s29, 128  }
  0x42   : > { %1532 = vsyncadd (%p1717_p12), %s466_s29, 4294967168  ;;  %s475_s11 = sand.u32 1, %s1679_s23   ;;  %s478_s27 = scalar_lea.vmem [#allocation5], %s1791_s17 }
  0x43   : > { %s476_s19 = scalar_lea.sflag [#allocation6], %s475_s11 }
  0x44   : > { %1534 = dma.done.wait (%p1717_p12), %s476_s19, 32  }
  0x45   : > { %1536 = vsyncadd (%p1717_p12), %s476_s19, 4294967264  ;;  %s487_s12 = scalar_lea.vmem [#allocation7], %s1791_s17 }
  0x46   : > { %1538 = dma.done.wait (%p71_p1), [#allocation9], 512  }
  0x47   : > { %1540 = vsyncadd (%p71_p1), [#allocation9], 4294966784 }
  0x48   : > { %1542 = dma.done.wait (%p71_p1), [#allocation12], 256  }
  0x49   : > { %1544 = vsyncadd (%p71_p1), [#allocation12], 4294967040  ;;  %vm562_vm0 = vcmask 261120   ;;  %v561_v0 = vld [vmem:[%s469_s5] sm:$0xff]  ;;  %v1582_v2 = vmov 32.0   ;;  %v1103_v17 = vld [vmem:[#allocation8] sm:$0xff] }
  0x4a   : > { %v563_v1 = vsel %vm562_vm0, %v561_v0, 0.0  ;;  %1237 = vrcp.f32 %v1582_v2  ;;  %v1104_v14 = vld [vmem:[#allocation8 + $0x8] sm:$0xff]  ;;  %v1106_v15 = vld [vmem:[#allocation10 + $0x8] sm:$0xff]  ;;  %v1105_v18 = vld [vmem:[#allocation10] sm:$0xff]  ;;  %s1053_s15 = sshll.u32 %s1791_s17, 4  ;;  %vm707_vm5 = vcmask 60416  }
  0x4b   : > { %564 = vadd.xlane.f32.xlu0 %v563_v1  ;;  %v1108_v16 = vld [vmem:[#allocation11 + $0x8] sm:$0xff]  ;;  %633 = vmatpush.bf16.msra.mxu0 %v1104_v14  ;;  %v1107_v19 = vld [vmem:[#allocation11] sm:$0xff]  ;;  %s1835_s14 = scalar_lea.vmem [#allocation13], %s1053_s15  ;;  %s1583_s9 = smov 104  }
  0x4c   : > { %666 = vmatpush.bf16.msra.mxu1 %v1106_v15  ;;  %699 = vmatpush.bf16.msra.mxu2 %v1108_v16  ;;  %v592_v26 = vld [vmem:[%s487_s12] sm:$0x1]  ;;  %s1584_s30 = smov 120   ;;  %s1839_s1 = scalar_lea.vmem [#allocation14], %s1053_s15 }
  0x4d   : > { %v593_v28 = vadd.f32 1.0, %v592_v26  ;;  %v1233_v34 = vld [vmem:[%s478_s27] ss:$0 sm:$0xff]  ;;  %s1843_s26 = scalar_lea.vmem [#allocation16], %s1053_s15  ;;  %s1585_s25 = smov 112  }
  0x4e   : > { %v1234_v38 = vld [vmem:[%s1976_s6] ss:$0 sm:$0xff]  ;;  %s1854_s4 = sshll.u32 %s1567_s20, 4  ;;  %s803_s29 = sshll.u32 %s1839_s1, 4  ;;  %s1869_s29 = int_to_ptr.vmem [resolvable:$true] %s803_s29 }
  0x4f   : > { %634 = vmatpush.bf16.msra.mxu0 %v1103_v17  ;;  %v595_v31 = vperm.slane %v593_v28, 0  ;;  %v1235_v39 = vld [vmem:[%s1977_s7] ss:$0 sm:$0xff]  ;;  %s802_s27 = scalar_lea.hbm %s1980_s10, %s1854_s4  ;;  %s2022_s24 = sld [smem:[#allocation35_spill]] }
  0x50   : > { %v1238_v3 = vpop.eup %1237  ;;  %667 = vmatpush.bf16.msra.mxu1 %v1105_v18  ;;  %700 = vmatpush.bf16.msra.mxu2 %v1107_v19  ;;  %v1236_v46 = vld [vmem:[%s1978_s8] ss:$0 sm:$0xff]  ;;  %s1871_s3 = sshll.u32 %s802_s27, 4  ;;  %s821_s15 = sshll.u32 %s1843_s26, 4  ;;  %s806_s3 = int_to_ptr.hbm [resolvable:$true] %s1871_s3  ;;  %s1877_s15 = int_to_ptr.vmem [resolvable:$true] %s821_s15 }
  0x51   : > { %v567_v4 = vmul.f32 32.0, %v1238_v3  ;;  %vm571_vm1 = vweird.f32 %v1238_v3  ;;  %s1886_s22 = scalar_lea.sflag [#allocation15], %s475_s11  ;;  %s1441_s19 = scalar_lea.hbm %s1980_s10, 32 }
  0x53   : > { %v568_v5 = vsub.f32 1.0, %v567_v4 }
  0x55   : > { %v569_v6 = vmul.f32 %v1238_v3, %v568_v5  ;;  %s820_s20 = scalar_lea.hbm %s2022_s24, %s1854_s4 }
  0x56   : > { %s1874_s28 = sshll.u32 %s820_s20, 4  ;;  %s824_s28 = int_to_ptr.hbm [resolvable:$true] %s1874_s28 }
  0x57   : > { %v570_v7 = vadd.f32 %v1238_v3, %v569_v6 }
  0x59   : > { %v572_v8 = vsel %vm571_vm1, %v1238_v3, %v570_v7 }
  0xbe   : > { %v565_v9 = vpop.xlane.xlu0 %564 }
  0xbf   : > { %v573_v10 = vmul.f32 %v572_v8, %v565_v9 }
  0xc1   : > { %v574_v11 = vsub.f32 %v561_v0, %v573_v10 }
  0xc3   : > { %v575_v12 = vmul.f32 %v574_v11, %v574_v11 }
  0xc5   : > { %v576_v13 = vsel %vm562_vm0, %v575_v12, 0.0 }
  0xc6   : > { %577 = vadd.xlane.f32.xlu0 %v576_v13 }
 0x139   : > { %v578_v20 = vpop.xlane.xlu0 %577 }
 0x13a   : > { %v579_v21 = vmul.f32 %v578_v20, %v572_v8 }
 0x13c   : > { %v580_v22 = vadd.f32 1e-06, %v579_v21 }
 0x13e   : > { %1239 = vrsqrt.f32 %v580_v22  ;;  %vm587_vm3 = vweird.f32 %v580_v22 }
 0x144   : > { %v1240_v23 = vpop.eup %1239 }
 0x145   : > { %v582_v24 = vmul.f32 %v1240_v23, %v580_v22  ;;  %vm588_vm2 = vweird.f32 %v1240_v23 }
 0x146   : > { %vm589_vm4 = vmor %vm587_vm3, %vm588_vm2 }
 0x147   : > { %v583_v25 = vmul.f32 %v1240_v23, %v582_v24 }
 0x149   : > { %v584_v27 = vmul.f32 0.5, %v583_v25 }
 0x14b   : > { %v585_v29 = vsub.f32 1.5, %v584_v27 }
 0x14d   : > { %v586_v30 = vmul.f32 %v1240_v23, %v585_v29 }
 0x14f   : > { %v590_v32 = vsel %vm589_vm4, %v1240_v23, %v586_v30 }
 0x150   : > { %v591_v33 = vmul.f32 %v590_v32, %v574_v11 }
 0x152   : > { %v597_v35 = vmul.f32 %v595_v31, %v591_v33 }
 0x154   : > { %v602_v36 = vadd.f32 %v1233_v34, %v597_v35 }
 0x156   : > { %v603_v37 = vpack.c.bf16 %v602_v36, %v602_v36 }
 0x158   : > { %1064 = vmatmul.msk.bf16.vlgmr.msra.gmra.mxu0 %vm562_vm0, %v603_v37  ;;  %1073 = vmatmul.msk.bf16.vlgmr.msra.gmra.mxu1 %vm562_vm0, %v603_v37 }
 0x159   : > { %1082 = vmatmul.msk.bf16.vlgmr.msra.gmra.mxu2 %vm562_vm0, %v603_v37 }
 0x1d5   : > { %v636_v40 = vpop.f32.mrf.mxu0  ;;  %v669_v41 = vpop.f32.mrf.mxu1 }
 0x1d6   : > { %v637_v42 = vadd.f32 %v1234_v38, %v636_v40  ;;  %v670_v43 = vadd.f32 %v1235_v39, %v669_v41 }
 0x1d8   : > { %v706_v44 = vpack.c.bf16 %v637_v42, %v637_v42  ;;  %v709_v45 = vpack.c.bf16 %v670_v43, %v670_v43 }
 0x1da   : > { %708 = vst.msk [vmem:[%s1835_s14] sm:$0xf] %vm707_vm5, %v706_v44  ;;  %751 = vrot.lane.b32.xlu2 %v709_v45, %s1583_s9  ;;  %720 = vrot.lane.b32.xlu1 %v709_v45, %s1584_s30 }
 0x1db   : > { %710 = vst.msk [vmem:[%s1839_s1] sm:$0xf] %vm707_vm5, %v709_v45 }
 0x1dc   : > { %v702_v47 = vpop.f32.mrf.mxu2 }
 0x1dd   : > { %v703_v48 = vadd.f32 %v1236_v46, %v702_v47  ;;  %v638_v49 = vpop.f32.mrf.mxu0  ;;  %v671_v50 = vpop.f32.mrf.mxu1 }
 0x1df   : > { %v711_v51 = vpack.c.bf16 %v703_v48, %v703_v48 }
 0x1e1   : > { %712 = vst.msk [vmem:[%s1843_s26] sm:$0xf] %vm707_vm5, %v711_v51  ;;  %726 = vrot.lane.b32.xlu0 %v711_v51, %s1584_s30 }
 0x1e2   : > { %736 = vrot.lane.b32.xlu1 %v709_v45, %s1585_s25  ;;  %714 = vrot.lane.b32.xlu2 %v706_v44, %s1584_s30 }
 0x1e4   : > { %v704_v52 = vpop.f32.mrf.mxu2 }
 0x1ea   : > { %731 = vrot.lane.b32.xlu1 %v706_v44, %s1585_s25  ;;  %741 = vrot.lane.b32.xlu2 %v711_v51, %s1585_s25 }
 0x1f2   : > { %746 = vrot.lane.b32.xlu1 %v706_v44, %s1583_s9  ;;  %756 = vrot.lane.b32.xlu2 %v711_v51, %s1583_s9  ;;  %s1435_s9 = sshra.s32 %s806_s3, 4  ;;  %s1436_s9 = int_to_ptr.hbm [resolvable:$true] %s1435_s9 }
 0x1f3   : > { %s1437_s30 = scalar_lea.hbm %s1436_s9, 16  ;;  %p1442_p6 = scmp.lt.s32.totalorder %s1436_s9, %s1980_s10 }
 0x1f4   : > { %p1438_p1 = scmp.ne.s32.totalorder %s1436_s9, %s1437_s30  ;;  %p1443_p8 = scmp.lt.s32.totalorder %s1441_s19, %s1437_s30 }
 0x1f6   : > { %p1439_p3 = pnand %p1438_p1, %p1726_p4  ;;  %p1444_p10 = por %p1443_p8, %p1442_p6 }
 0x1f8   : > { %p1440_p5 = pneg %p1439_p3 }
 0x1fa   : > { %p1445_p11 = pnand %p1444_p10, %p1440_p5 }
 0x234   : > { %v752_v53 = vpop.permute.xlu2 %751 }
 0x235   : > { %1090 = vst.msk [vmem:[%s1839_s1 + $0xc] sm:$0xf] %vm707_vm5, %v752_v53 }
 0x23c   : > { %v715_v54 = vpop.permute.xlu2 %714 }
 0x23d   : > { %1083 = vst.msk [vmem:[%s1835_s14 + $0x4] sm:$0xf] %vm707_vm5, %v715_v54 }
 0x244   : > { %v742_v55 = vpop.permute.xlu2 %741 }
 0x245   : > { %1088 = vst.msk [vmem:[%s1843_s26 + $0x8] sm:$0xf] %vm707_vm5, %v742_v55 }
 0x24c   : > { %v721_v56 = vpop.permute.xlu1 %720  ;;  %v757_v57 = vpop.permute.xlu2 %756 }
 0x24d   : > { %1084 = vst.msk [vmem:[%s1839_s1 + $0x4] sm:$0xf] %vm707_vm5, %v721_v56 }
 0x24e   : > { %1091 = vst.msk [vmem:[%s1843_s26 + $0xc] sm:$0xf] %vm707_vm5, %v757_v57 }
 0x253   : > { %v727_v58 = vpop.permute.xlu0 %726 }
 0x254   : > { %1085 = vst.msk [vmem:[%s1843_s26 + $0x4] sm:$0xf] %vm707_vm5, %v727_v58  ;;  %v737_v59 = vpop.permute.xlu1 %736 }
 0x255   : > { %1087 = vst.msk [vmem:[%s1839_s1 + $0x8] sm:$0xf] %vm707_vm5, %v737_v59 }
 0x256   : > { %1448 = shalt.err (!%p1445_p11)
}
 0x257   : > { %s1586_s23 = smov 64   ;;  %s1587_s11 = smov 4  }
 0x258   : > { %1131 = dma.vmem_to_hbm [thread:$0]  (%p1726_p4), %s1869_s29, 256, %s806_s3, %s1886_s22, %s1586_s23, %s1586_s23, %s1587_s11  }
 0x259   : > { %s1463_s1 = sshra.s32 %s824_s28, 4  ;;  %s1469_s9 = scalar_lea.hbm %s2022_s24, 32  ;;  %s1464_s1 = int_to_ptr.hbm [resolvable:$true] %s1463_s1 }
 0x25a   : > { %s1465_s12 = scalar_lea.hbm %s1464_s1, 16  ;;  %p1470_p2 = scmp.lt.s32.totalorder %s1464_s1, %s2022_s24 }
 0x25b   : > { %p1466_p12 = scmp.ne.s32.totalorder %s1464_s1, %s1465_s12  ;;  %p1471_p9 = scmp.lt.s32.totalorder %s1469_s9, %s1465_s12 }
 0x25d   : > { %p1467_p13 = pnand %p1466_p12, %p1726_p4  ;;  %p1472_p1 = por %p1471_p9, %p1470_p2 }
 0x25f   : > { %p1468_p0 = pneg %p1467_p13 }
 0x261   : > { %p1473_p3 = pnand %p1472_p1, %p1468_p0 }
 0x263   : > { %1476 = shalt.err (!%p1473_p3)
}
 0x264   : > { %1132 = dma.vmem_to_hbm [thread:$0]  (%p1726_p4), %s1877_s15, 256, %s824_s28, %s1886_s22, %s1586_s23, %s1586_s23, %s1587_s11   ;;  %v732_v60 = vpop.permute.xlu1 %731 }
 0x265   : > { %1086 = vst.msk [vmem:[%s1835_s14 + $0x8] sm:$0xf] %vm707_vm5, %v732_v60  ;;  %s2024_s5 = sld [smem:[#allocation34_spill]]  ;;  %s785_s27 = sshll.u32 %s1835_s14, 4  ;;  %s786_s27 = int_to_ptr.vmem [resolvable:$true] %s785_s27 }
 0x266   : > { %s762_s1 = scalar_lea.sflag [#allocation4], %s1791_s17 }
 0x26b   : > { %s784_s19 = scalar_lea.hbm %s2024_s5, %s1854_s4  ;;  %s1497_s22 = scalar_lea.hbm %s2024_s5, 32 }
 0x26c   : > { %s787_s26 = sshll.u32 %s784_s19, 4  ;;  %v747_v61 = vpop.permute.xlu1 %746  ;;  %s788_s26 = int_to_ptr.hbm [resolvable:$true] %s787_s26 }
 0x26d   : > { %1089 = vst.msk [vmem:[%s1835_s14 + $0xc] sm:$0xf] %vm707_vm5, %v747_v61  ;;  %s1491_s12 = sshra.s32 %s788_s26, 4  ;;  %s1492_s12 = int_to_ptr.hbm [resolvable:$true] %s1491_s12 }
 0x26e   : > { %s1493_s13 = scalar_lea.hbm %s1492_s12, 16  ;;  %p1498_p10 = scmp.lt.s32.totalorder %s1492_s12, %s2024_s5 }
 0x26f   : > { %p1494_p5 = scmp.ne.s32.totalorder %s1492_s12, %s1493_s13  ;;  %p1499_p11 = scmp.lt.s32.totalorder %s1497_s22, %s1493_s13 }
 0x271   : > { %p1495_p6 = pnand %p1494_p5, %p1726_p4  ;;  %p1500_p12 = por %p1499_p11, %p1498_p10 }
 0x273   : > { %p1496_p8 = pneg %p1495_p6 }
 0x275   : > { %p1501_p13 = pnand %p1500_p12, %p1496_p8 }
 0x277   : > { %1504 = shalt.err (!%p1501_p13)
}
 0x278   : > { %1130 = dma.vmem_to_hbm [thread:$0]  (%p1726_p4), %s786_s27, 256, %s788_s26, %s762_s1, %s1586_s23, %s1586_s23, %s1587_s11  }
 0x279 PF: > { %s2025_s17 = sld [smem:[#allocation23_spill]] }
 0x27a   : > { %s2027_s9 = sld [smem:[#allocation25_spill]] }
 0x27f   : > { %s838_s30 = sand.u32 1, %s2025_s17  }
 0x280   : > { %p2028_p0 = scmp.ge.s32.totalorder %s2027_s9, 2  ;;  %s839_s25 = scalar_lea.sflag [#allocation4], %s838_s30 }
 0x282   : > { %p1157_p2 = pnand %p2028_p0, %p1734_p7 }
 0x284   : > { %p1158_p9 = pneg %p1157_p2 }
 0x286   : > { %1546 = dma.done.wait (%p1158_p9), %s839_s25, 256  }
 0x287   : > { %1548 = vsyncadd (%p1158_p9), %s839_s25, 4294967040  ;;  %s2029_s29 = sadd.s32 4294967294, %s2027_s9  }
 0x288   : > { %s848_s3 = sand.u32 1, %s2029_s29  }
 0x289   : > { %s849_s16 = scalar_lea.sflag [#allocation15], %s848_s3 }
 0x28a   : > { %1550 = dma.done.wait (%p1158_p9), %s849_s16, 512  }
 0x28b   : > { %1552 = vsyncadd (%p1158_p9), %s849_s16, 4294966784  ;;  %s36_s22 = sadd.s32 1, %s2027_s9   ;;  %s2030_s23 = sld [smem:[#allocation24_spill]] }
 0x28c   : > { %p33_p4 = scmp.ge.s32.totalorder %s36_s22, 4   ;;  %s2031_s19 = sld [smem:[#allocation28_spill]] }
 0x28d   : > { %s2032_s11 = sld [smem:[#allocation26_spill]]  ;;  %s2033_s17 = smov %s1559_s18 }
 0x28e   : > { %s2035_s20 = smov %s1571_s21 }
 0x28f   :  { %35 = sbr.rel (!%p33_p4) target bundleno = 19 (0x13), region = 178 }
 0x291   : > { %s2034_s18 = smov %s2030_s23 }
 0x293   : > { %s2036_s21 = smov %s2032_s11 }
 0x294   :  { %865 = vsyncpa [#allocation3], 1 }
 0x295   :  { %867 = vsyncpa [#allocation3 + $0x1], 1 }
 0x296   :  { %868 = vsyncpa [#allocation6], 1 }
 0x297   :  { %870 = vsyncpa [#allocation6 + $0x1], 1 }
 0x298   :  { %871 = vsyncpa [#allocation9], 1 }
 0x299   :  { %872 = vsyncpa [#allocation12], 1 }
 0x29a   :  { %873 = vsyncpa [#allocation4], 1 }
 0x29b   :  { %875 = vsyncpa [#allocation4 + $0x1], 1 }
 0x29c   :  { %876 = vsyncpa [#allocation15], 1 }
 0x29d   :  { %878 = vsyncpa [#allocation15 + $0x1], 1 }

</bundles_post_ra>
